<compile_context>
chip_gen: v6e
topology: v6e:2x2x1
jax: 0.10.0
libtpu: 0.0.40
codegen_flags: <defaults>
</compile_context>

<pallas_src>
import jax
import jax.numpy as jnp
from jax.experimental import pallas as pl
from jax.experimental.pallas import tpu as pltpu

HIDDEN = 256


def _reward_mlp_kernel(x_ref, a_ref,
                       w1x_ref, w1a_ref, b1_ref,
                       w2_ref, b2_ref,
                       w3_ref, b3_ref,
                       w4_ref, b4_ref,
                       w5_ref, b5_ref,
                       out_ref):
    """One batch tile: 4x (Linear + ReLU) + final Linear, all in VMEM.

    Weights are bf16, matmuls accumulate in f32 (preferred_element_type),
    bias-add / ReLU are f32 (keeps v5e's VPU happy, exact on v6e/v7x too).
    """
    # Layer 1: fused concat via split weight.
    x_bf = x_ref[...].astype(jnp.bfloat16)
    a_bf = a_ref[...].astype(jnp.bfloat16)
    h = (jnp.dot(x_bf, w1x_ref[...], preferred_element_type=jnp.float32)
         + jnp.dot(a_bf, w1a_ref[...], preferred_element_type=jnp.float32)
         + b1_ref[...])
    h = jnp.maximum(h, 0.0)

    # Layers 2-4: Linear + ReLU.
    for w_ref, b_ref in ((w2_ref, b2_ref), (w3_ref, b3_ref), (w4_ref, b4_ref)):
        h = jnp.dot(h.astype(jnp.bfloat16), w_ref[...],
                    preferred_element_type=jnp.float32) + b_ref[...]
        h = jnp.maximum(h, 0.0)

    # Layer 5: Linear (no activation).
    out = jnp.dot(h.astype(jnp.bfloat16), w5_ref[...],
                  preferred_element_type=jnp.float32) + b5_ref[...]
    out_ref[...] = out.astype(out_ref.dtype)


def reward_model_forward(x, a, params, *, tile_b=256):
    """Pallas-backed equivalent of RewardModel.forward(x, a)."""
    B = x.shape[0]
    state_dim = x.shape[1]
    action_dim = a.shape[1]

    (w1x, w1a, b1), (w2, b2), (w3, b3), (w4, b4), (w5, b5) = params

    # Pad batch to a multiple of 8 (sublanes) and pick the batch tile.
    b8 = ((B + 7) // 8) * 8
    tile_b = min(tile_b, b8)
    padded_b = ((b8 + tile_b - 1) // tile_b) * tile_b
    if padded_b != B:
        pad = padded_b - B
        x = jnp.pad(x, ((0, pad), (0, 0)))
        a = jnp.pad(a, ((0, pad), (0, 0)))
    num_tiles = padded_b // tile_b

    def act_spec(feat):
        # Batch-tiled activation: new block each grid step -> pipelined DMA.
        return pl.BlockSpec((tile_b, feat), lambda i: (i, 0))

    def resident_spec(shape):
        # Constant block index -> weights/biases stay VMEM-resident.
        return pl.BlockSpec(shape, lambda i: (0,) * len(shape))

    weights = (w1x, w1a, b1, w2, b2, w3, b3, w4, b4, w5, b5)

    out = pl.pallas_call(
        _reward_mlp_kernel,
        out_shape=jax.ShapeDtypeStruct((padded_b, 1), jnp.float32),
        grid=(num_tiles,),
        in_specs=([act_spec(state_dim), act_spec(action_dim)]
                  + [resident_spec(w.shape) for w in weights]),
        out_specs=pl.BlockSpec((tile_b, 1), lambda i: (i, 0)),
        compiler_params=pltpu.CompilerParams(
            dimension_semantics=("parallel",)),   # megacore sharding on v7x
    )(x, a, *weights)

    return out[:B, 0]                             # drop padding, .squeeze(-1)


def _orthogonal(key, shape, dtype=jnp.float32):
    """Deterministic orthogonal init (same semantics as nn.init.orthogonal_)."""
    rows, cols = shape
    n = max(rows, cols)
    g = jax.random.normal(key, (n, n), dtype=jnp.float32)
    q, r = jnp.linalg.qr(g)
    d = jnp.diag(r)
    q = q * jnp.where(d >= 0, 1.0, -1.0)          # sign-safe (no zeroed columns)
    return q[:rows, :cols].astype(dtype)


def init_reward_model_params(key, state_dim, action_dim):
    """Build (w, b) pairs; weights in (in, out) layout, bf16; fc1 split."""
    d_in = state_dim + action_dim
    dims = [(d_in, HIDDEN), (HIDDEN, HIDDEN), (HIDDEN, HIDDEN),
            (HIDDEN, HIDDEN), (HIDDEN, 1)]
    params = []
    for layer, (fan_in, fan_out) in enumerate(dims):
        key, wk, bk = jax.random.split(key, 3)
        # PyTorch orthogonal_ acts on (out, in); transpose to (in, out) layout.
        w = _orthogonal(wk, (fan_out, fan_in)).T.astype(jnp.bfloat16)
        bound = 1.0 / (fan_in ** 0.5)
        b = jax.random.uniform(bk, (1, fan_out), jnp.float32, -bound, bound)
        if layer == 0:
            # Split fc1 weight so the concat can be fused into the kernel:
            # cat([x, a]) @ W1  ==  x @ W1[:state_dim] + a @ W1[state_dim:].
            params.append((w[:state_dim], w[state_dim:], b))
        else:
            params.append((w, b))
    return params


def _reference_forward(x, a, params):
    """Plain-JAX reference doing the identical mixed-precision math."""
    (w1x, w1a, b1), *rest = params
    h = (jnp.dot(x.astype(jnp.bfloat16), w1x, preferred_element_type=jnp.float32)
         + jnp.dot(a.astype(jnp.bfloat16), w1a, preferred_element_type=jnp.float32)
         + b1)
    h = jnp.maximum(h, 0.0)
    for i, (w, b) in enumerate(rest):
        h = jnp.dot(h.astype(jnp.bfloat16), w,
                    preferred_element_type=jnp.float32) + b
        if i < len(rest) - 1:
            h = jnp.maximum(h, 0.0)
    return h[:, 0]


if __name__ == "__main__":
    state_dim, action_dim, batch = 11, 3, 8

    key = jax.random.PRNGKey(0)
    kp, kx, ka = jax.random.split(key, 3)

    params = init_reward_model_params(kp, state_dim, action_dim)
    x = jax.random.normal(kx, (batch, state_dim), jnp.float32)
    a = jax.random.normal(ka, (batch, action_dim), jnp.float32)

    out = reward_model_forward(x, a, params)
    out = jax.block_until_ready(out)

    ref = _reference_forward(x, a, params)
    assert out.shape == (batch,), out.shape
    assert jnp.allclose(out, ref, atol=2e-3, rtol=2e-3), (out, ref)

    print("KERNEL_OK")
</pallas_src>

<mosaic_0001>
module attributes {stable_mosaic.version = 11 : i64} {
  func.func @_reward_mlp_kernel(%arg0: i32, %arg1: memref<8x11xf32, #tpu.memory_space<vmem>>, %arg2: memref<8x3xf32, #tpu.memory_space<vmem>>, %arg3: memref<11x256xbf16, #tpu.memory_space<vmem>>, %arg4: memref<3x256xbf16, #tpu.memory_space<vmem>>, %arg5: memref<1x256xf32, #tpu.memory_space<vmem>>, %arg6: memref<256x256xbf16, #tpu.memory_space<vmem>>, %arg7: memref<1x256xf32, #tpu.memory_space<vmem>>, %arg8: memref<256x256xbf16, #tpu.memory_space<vmem>>, %arg9: memref<1x256xf32, #tpu.memory_space<vmem>>, %arg10: memref<256x256xbf16, #tpu.memory_space<vmem>>, %arg11: memref<1x256xf32, #tpu.memory_space<vmem>>, %arg12: memref<256x1xbf16, #tpu.memory_space<vmem>>, %arg13: memref<1x1xf32, #tpu.memory_space<vmem>>, %arg14: memref<8x1xf32, #tpu.memory_space<vmem>>) attributes {dimension_semantics = [#tpu.dimension_semantics<parallel>], iteration_bounds = array<i64: 1>, scalar_prefetch = 0 : i64, scratch_operands = 0 : i64, tpu.core_type = #tpu.core_type<tc>, window_params = [{transform_indices = @transform_0, window_bounds = array<i64: 8, 11>}, {transform_indices = @transform_1, window_bounds = array<i64: 8, 3>}, {pipeline_mode = #tpu.pipeline_mode<synchronous>, transform_indices = @transform_2, window_bounds = array<i64: 11, 256>}, {pipeline_mode = #tpu.pipeline_mode<synchronous>, transform_indices = @transform_3, window_bounds = array<i64: 3, 256>}, {pipeline_mode = #tpu.pipeline_mode<synchronous>, transform_indices = @transform_4, window_bounds = array<i64: 1, 256>}, {pipeline_mode = #tpu.pipeline_mode<synchronous>, transform_indices = @transform_5, window_bounds = array<i64: 256, 256>}, {pipeline_mode = #tpu.pipeline_mode<synchronous>, transform_indices = @transform_6, window_bounds = array<i64: 1, 256>}, {pipeline_mode = #tpu.pipeline_mode<synchronous>, transform_indices = @transform_7, window_bounds = array<i64: 256, 256>}, {pipeline_mode = #tpu.pipeline_mode<synchronous>, transform_indices = @transform_8, window_bounds = array<i64: 1, 256>}, {pipeline_mode = #tpu.pipeline_mode<synchronous>, transform_indices = @transform_9, window_bounds = array<i64: 256, 256>}, {pipeline_mode = #tpu.pipeline_mode<synchronous>, transform_indices = @transform_10, window_bounds = array<i64: 1, 256>}, {pipeline_mode = #tpu.pipeline_mode<synchronous>, transform_indices = @transform_11, window_bounds = array<i64: 256, 1>}, {pipeline_mode = #tpu.pipeline_mode<synchronous>, transform_indices = @transform_12, window_bounds = array<i64: 1, 1>}, {transform_indices = @transform_13, window_bounds = array<i64: 8, 1>}]} {
    %c0 = arith.constant 0 : index
    %c0_0 = arith.constant 0 : index
    %0 = vector.load %arg1[%c0, %c0_0] : memref<8x11xf32, #tpu.memory_space<vmem>>, vector<8x11xf32>
    %1 = arith.truncf %0 : vector<8x11xf32> to vector<8x11xbf16>
    %c0_1 = arith.constant 0 : index
    %c0_2 = arith.constant 0 : index
    %2 = vector.load %arg2[%c0_1, %c0_2] : memref<8x3xf32, #tpu.memory_space<vmem>>, vector<8x3xf32>
    %3 = arith.truncf %2 : vector<8x3xf32> to vector<8x3xbf16>
    %c0_3 = arith.constant 0 : index
    %c0_4 = arith.constant 0 : index
    %4 = vector.load %arg3[%c0_3, %c0_4] : memref<11x256xbf16, #tpu.memory_space<vmem>>, vector<11x256xbf16>
    %cst = arith.constant dense<0.000000e+00> : vector<8x256xf32>
    %5 = tpu.matmul %1, %4, %cst {dimension_numbers = #tpu.dot_dimension_numbers<[1], [0], [0], [1], [0, 0, 1, 1], [], []>} : vector<8x11xbf16>, vector<11x256xbf16>, vector<8x256xf32> -> vector<8x256xf32>
    %c0_5 = arith.constant 0 : index
    %c0_6 = arith.constant 0 : index
    %6 = vector.load %arg4[%c0_5, %c0_6] : memref<3x256xbf16, #tpu.memory_space<vmem>>, vector<3x256xbf16>
    %cst_7 = arith.constant dense<0.000000e+00> : vector<8x256xf32>
    %7 = tpu.matmul %3, %6, %cst_7 {dimension_numbers = #tpu.dot_dimension_numbers<[1], [0], [0], [1], [0, 0, 1, 1], [], []>} : vector<8x3xbf16>, vector<3x256xbf16>, vector<8x256xf32> -> vector<8x256xf32>
    %8 = arith.addf %5, %7 : vector<8x256xf32>
    %c0_8 = arith.constant 0 : index
    %c0_9 = arith.constant 0 : index
    %9 = vector.load %arg5[%c0_8, %c0_9] : memref<1x256xf32, #tpu.memory_space<vmem>>, vector<1x256xf32>
    %10 = vector.broadcast %9 : vector<1x256xf32> to vector<8x256xf32>
    %11 = arith.addf %8, %10 : vector<8x256xf32>
    %cst_10 = arith.constant 0.000000e+00 : f32
    %12 = vector.broadcast %cst_10 : f32 to vector<8x256xf32>
    %13 = arith.maximumf %11, %12 : vector<8x256xf32>
    %14 = arith.truncf %13 : vector<8x256xf32> to vector<8x256xbf16>
    %c0_11 = arith.constant 0 : index
    %c0_12 = arith.constant 0 : index
    %15 = vector.load %arg6[%c0_11, %c0_12] : memref<256x256xbf16, #tpu.memory_space<vmem>>, vector<256x256xbf16>
    %cst_13 = arith.constant dense<0.000000e+00> : vector<8x256xf32>
    %16 = tpu.matmul %14, %15, %cst_13 {dimension_numbers = #tpu.dot_dimension_numbers<[1], [0], [0], [1], [0, 0, 1, 1], [], []>} : vector<8x256xbf16>, vector<256x256xbf16>, vector<8x256xf32> -> vector<8x256xf32>
    %c0_14 = arith.constant 0 : index
    %c0_15 = arith.constant 0 : index
    %17 = vector.load %arg7[%c0_14, %c0_15] : memref<1x256xf32, #tpu.memory_space<vmem>>, vector<1x256xf32>
    %18 = vector.broadcast %17 : vector<1x256xf32> to vector<8x256xf32>
    %19 = arith.addf %16, %18 : vector<8x256xf32>
    %cst_16 = arith.constant 0.000000e+00 : f32
    %20 = vector.broadcast %cst_16 : f32 to vector<8x256xf32>
    %21 = arith.maximumf %19, %20 : vector<8x256xf32>
    %22 = arith.truncf %21 : vector<8x256xf32> to vector<8x256xbf16>
    %c0_17 = arith.constant 0 : index
    %c0_18 = arith.constant 0 : index
    %23 = vector.load %arg8[%c0_17, %c0_18] : memref<256x256xbf16, #tpu.memory_space<vmem>>, vector<256x256xbf16>
    %cst_19 = arith.constant dense<0.000000e+00> : vector<8x256xf32>
    %24 = tpu.matmul %22, %23, %cst_19 {dimension_numbers = #tpu.dot_dimension_numbers<[1], [0], [0], [1], [0, 0, 1, 1], [], []>} : vector<8x256xbf16>, vector<256x256xbf16>, vector<8x256xf32> -> vector<8x256xf32>
    %c0_20 = arith.constant 0 : index
    %c0_21 = arith.constant 0 : index
    %25 = vector.load %arg9[%c0_20, %c0_21] : memref<1x256xf32, #tpu.memory_space<vmem>>, vector<1x256xf32>
    %26 = vector.broadcast %25 : vector<1x256xf32> to vector<8x256xf32>
    %27 = arith.addf %24, %26 : vector<8x256xf32>
    %cst_22 = arith.constant 0.000000e+00 : f32
    %28 = vector.broadcast %cst_22 : f32 to vector<8x256xf32>
    %29 = arith.maximumf %27, %28 : vector<8x256xf32>
    %30 = arith.truncf %29 : vector<8x256xf32> to vector<8x256xbf16>
    %c0_23 = arith.constant 0 : index
    %c0_24 = arith.constant 0 : index
    %31 = vector.load %arg10[%c0_23, %c0_24] : memref<256x256xbf16, #tpu.memory_space<vmem>>, vector<256x256xbf16>
    %cst_25 = arith.constant dense<0.000000e+00> : vector<8x256xf32>
    %32 = tpu.matmul %30, %31, %cst_25 {dimension_numbers = #tpu.dot_dimension_numbers<[1], [0], [0], [1], [0, 0, 1, 1], [], []>} : vector<8x256xbf16>, vector<256x256xbf16>, vector<8x256xf32> -> vector<8x256xf32>
    %c0_26 = arith.constant 0 : index
    %c0_27 = arith.constant 0 : index
    %33 = vector.load %arg11[%c0_26, %c0_27] : memref<1x256xf32, #tpu.memory_space<vmem>>, vector<1x256xf32>
    %34 = vector.broadcast %33 : vector<1x256xf32> to vector<8x256xf32>
    %35 = arith.addf %32, %34 : vector<8x256xf32>
    %cst_28 = arith.constant 0.000000e+00 : f32
    %36 = vector.broadcast %cst_28 : f32 to vector<8x256xf32>
    %37 = arith.maximumf %35, %36 : vector<8x256xf32>
    %38 = arith.truncf %37 : vector<8x256xf32> to vector<8x256xbf16>
    %c0_29 = arith.constant 0 : index
    %c0_30 = arith.constant 0 : index
    %39 = vector.load %arg12[%c0_29, %c0_30] : memref<256x1xbf16, #tpu.memory_space<vmem>>, vector<256x1xbf16>
    %cst_31 = arith.constant dense<0.000000e+00> : vector<8x1xf32>
    %40 = tpu.matmul %38, %39, %cst_31 {dimension_numbers = #tpu.dot_dimension_numbers<[1], [0], [0], [1], [0, 0, 1, 1], [], []>} : vector<8x256xbf16>, vector<256x1xbf16>, vector<8x1xf32> -> vector<8x1xf32>
    %c0_32 = arith.constant 0 : index
    %c0_33 = arith.constant 0 : index
    %41 = vector.load %arg13[%c0_32, %c0_33] : memref<1x1xf32, #tpu.memory_space<vmem>>, vector<1x1xf32>
    %42 = vector.broadcast %41 : vector<1x1xf32> to vector<8x1xf32>
    %43 = arith.addf %40, %42 : vector<8x1xf32>
    %c0_34 = arith.constant 0 : index
    %c0_35 = arith.constant 0 : index
    %44 = vector.load %arg14[%c0_34, %c0_35] : memref<8x1xf32, #tpu.memory_space<vmem>>, vector<8x1xf32>
    tpu.vector_store %arg14[%c0_34, %c0_35], %43 {strides = array<i32>} : memref<8x1xf32, #tpu.memory_space<vmem>>, vector<8x1xf32>,
    return
  }
  func.func @transform_0(%arg0: i32) -> (i32, i32) {
    %c0_i32 = arith.constant 0 : i32
    %c0_i32_0 = arith.constant 0 : i32
    return %arg0, %c0_i32 : i32, i32
  }
  func.func @transform_1(%arg0: i32) -> (i32, i32) {
    %c0_i32 = arith.constant 0 : i32
    %c0_i32_0 = arith.constant 0 : i32
    return %arg0, %c0_i32 : i32, i32
  }
  func.func @transform_2(%arg0: i32) -> (i32, i32) {
    %c0_i32 = arith.constant 0 : i32
    %c0_i32_0 = arith.constant 0 : i32
    %c0_i32_1 = arith.constant 0 : i32
    return %c0_i32, %c0_i32_0 : i32, i32
  }
  func.func @transform_3(%arg0: i32) -> (i32, i32) {
    %c0_i32 = arith.constant 0 : i32
    %c0_i32_0 = arith.constant 0 : i32
    %c0_i32_1 = arith.constant 0 : i32
    return %c0_i32, %c0_i32_0 : i32, i32
  }
  func.func @transform_4(%arg0: i32) -> (i32, i32) {
    %c0_i32 = arith.constant 0 : i32
    %c0_i32_0 = arith.constant 0 : i32
    %c0_i32_1 = arith.constant 0 : i32
    return %c0_i32, %c0_i32_0 : i32, i32
  }
  func.func @transform_5(%arg0: i32) -> (i32, i32) {
    %c0_i32 = arith.constant 0 : i32
    %c0_i32_0 = arith.constant 0 : i32
    %c0_i32_1 = arith.constant 0 : i32
    return %c0_i32, %c0_i32_0 : i32, i32
  }
  func.func @transform_6(%arg0: i32) -> (i32, i32) {
    %c0_i32 = arith.constant 0 : i32
    %c0_i32_0 = arith.constant 0 : i32
    %c0_i32_1 = arith.constant 0 : i32
    return %c0_i32, %c0_i32_0 : i32, i32
  }
  func.func @transform_7(%arg0: i32) -> (i32, i32) {
    %c0_i32 = arith.constant 0 : i32
    %c0_i32_0 = arith.constant 0 : i32
    %c0_i32_1 = arith.constant 0 : i32
    return %c0_i32, %c0_i32_0 : i32, i32
  }
  func.func @transform_8(%arg0: i32) -> (i32, i32) {
    %c0_i32 = arith.constant 0 : i32
    %c0_i32_0 = arith.constant 0 : i32
    %c0_i32_1 = arith.constant 0 : i32
    return %c0_i32, %c0_i32_0 : i32, i32
  }
  func.func @transform_9(%arg0: i32) -> (i32, i32) {
    %c0_i32 = arith.constant 0 : i32
    %c0_i32_0 = arith.constant 0 : i32
    %c0_i32_1 = arith.constant 0 : i32
    return %c0_i32, %c0_i32_0 : i32, i32
  }
  func.func @transform_10(%arg0: i32) -> (i32, i32) {
    %c0_i32 = arith.constant 0 : i32
    %c0_i32_0 = arith.constant 0 : i32
    %c0_i32_1 = arith.constant 0 : i32
    return %c0_i32, %c0_i32_0 : i32, i32
  }
  func.func @transform_11(%arg0: i32) -> (i32, i32) {
    %c0_i32 = arith.constant 0 : i32
    %c0_i32_0 = arith.constant 0 : i32
    %c0_i32_1 = arith.constant 0 : i32
    return %c0_i32, %c0_i32_0 : i32, i32
  }
  func.func @transform_12(%arg0: i32) -> (i32, i32) {
    %c0_i32 = arith.constant 0 : i32
    %c0_i32_0 = arith.constant 0 : i32
    %c0_i32_1 = arith.constant 0 : i32
    return %c0_i32, %c0_i32_0 : i32, i32
  }
  func.func @transform_13(%arg0: i32) -> (i32, i32) {
    %c0_i32 = arith.constant 0 : i32
    %c0_i32_0 = arith.constant 0 : i32
    return %arg0, %c0_i32 : i32, i32
  }
}

</mosaic_0001>

<bundles_post_ra>
// kernel: tpu_custom_call.1
= control target key start
LH: loop header
LB: loop body
LE: loop exit
PB: predicated region body
PF: predicated region fallthrough
CT: control target
= control target key end

     0   :  { %s1723_s0 = inlined_call_operand.vmem [shape: f32[8,11], index: 0, kind: input, shape index: {}]   ;;  %s1724_s1 = inlined_call_operand.vmem [shape: f32[8,3], index: 1, kind: input, shape index: {}]   ;;  %s1725_s2 = inlined_call_operand.vmem [shape: bf16[11,256], index: 2, kind: input, shape index: {}]   ;;  %s1726_s3 = inlined_call_operand.vmem [shape: bf16[3,256], index: 3, kind: input, shape index: {}]   ;;  %s1727_s4 = inlined_call_operand.vmem [shape: f32[1,256], index: 4, kind: input, shape index: {}]   ;;  %s1728_s5 = inlined_call_operand.hbm [shape: bf16[256,256], index: 5, kind: input, shape index: {}]   ;;  %s1729_s6 = inlined_call_operand.vmem [shape: f32[1,256], index: 6, kind: input, shape index: {}]   ;;  %s1730_s7 = inlined_call_operand.hbm [shape: bf16[256,256], index: 7, kind: input, shape index: {}]   ;;  %s1731_s8 = inlined_call_operand.vmem [shape: f32[1,256], index: 8, kind: input, shape index: {}]   ;;  %s1732_s9 = inlined_call_operand.hbm [shape: bf16[256,256], index: 9, kind: input, shape index: {}]   ;;  %s1733_s10 = inlined_call_operand.vmem [shape: f32[1,256], index: 10, kind: input, shape index: {}]   ;;  %s1734_s11 = inlined_call_operand.vmem [shape: bf16[256,1], index: 11, kind: input, shape index: {}]   ;;  %s1735_s12 = inlined_call_operand.<no memory space> [shape: f32[1,1], index: 12, kind: input, shape index: {}]   ;;  %s1736_s13 = inlined_call_operand.vmem [shape: f32[8,1], index: 13, kind: output, shape index: {}]  }
   0x1   :  { %v18_v0 = vstv %s1735_s12 }
   0x2   :  { %19 = vst [vmem:[#allocation2] sm:$0x1] %v18_v0 }
   0x3   :  { %20 = vsyncpa [#allocation4], 0 }
   0x4   :  { %21 = vsyncpa [#allocation6], 0  ;;  %s1544_s27 = smov [#allocation5]   ;;  %s1545_s29 = smov [#allocation3]  }
   0x5   :  { %s51_s28 = sshll.u32 %s1544_s27, 4  ;;  %s37_s30 = sshll.u32 %s1545_s29, 4  ;;  %s52_s28 = int_to_ptr.vmem [resolvable:$true] %s51_s28  ;;  %s38_s30 = int_to_ptr.vmem [resolvable:$true] %s37_s30 }
   0x6   :  { %s1488_s14 = scalar_lea.vmem %s52_s28, 4096  ;;  %p1493_p1 = scmp.lt.s32.totalorder %s52_s28, %s52_s28 }
   0x7   :  { %p1489_p0 = scmp.ne.s32.totalorder %s52_s28, %s1488_s14  ;;  %p1494_p2 = scmp.lt.s32.totalorder %s1488_s14, %s1488_s14 }
   0x9   :  { %p1495_p3 = por %p1494_p2, %p1493_p1 }
   0xb   :  { %p1496_p4 = pnand %p1495_p3, %p1489_p0 }
   0xd   :  { %1499 = shalt.err (!%p1496_p4)
}
   0xe   :  { %s1546_s15 = smov 128   ;;  %s1547_s16 = smov 8  }
   0xf   :  { %57 = dma.hbm_to_vmem [thread:$0]  %s1730_s7, 4096, %s52_s28, [#allocation6], %s1546_s15, %s1546_s15, %s1547_s16  }
  0x10   :  { %s1508_s18 = scalar_lea.vmem %s38_s30, 4096  ;;  %p1513_p6 = scmp.lt.s32.totalorder %s38_s30, %s38_s30 }
  0x11   :  { %p1509_p5 = scmp.ne.s32.totalorder %s38_s30, %s1508_s18  ;;  %p1514_p7 = scmp.lt.s32.totalorder %s1508_s18, %s1508_s18 }
  0x13   :  { %p1515_p8 = por %p1514_p7, %p1513_p6 }
  0x15   :  { %p1516_p9 = pnand %p1515_p8, %p1509_p5 }
  0x17   :  { %1519 = shalt.err (!%p1516_p9)
}
  0x18   :  { %43 = dma.hbm_to_vmem [thread:$0]  %s1728_s5, 4096, %s38_s30, [#allocation4], %s1546_s15, %s1546_s15, %s1547_s16  }
  0x19   :  { %s1548_s21 = smov [#allocation7]  }
  0x1a   :  { %s65_s22 = sshll.u32 %s1548_s21, 4  ;;  %s66_s22 = int_to_ptr.vmem [resolvable:$true] %s65_s22 }
  0x1b   :  { %s1528_s23 = scalar_lea.vmem %s66_s22, 4096  ;;  %p1533_p11 = scmp.lt.s32.totalorder %s66_s22, %s66_s22 }
  0x1c   :  { %p1529_p10 = scmp.ne.s32.totalorder %s66_s22, %s1528_s23  ;;  %p1534_p12 = scmp.lt.s32.totalorder %s1528_s23, %s1528_s23 }
  0x1e   :  { %p1535_p13 = por %p1534_p12, %p1533_p11 }
  0x20   :  { %p1536_p0 = pnand %p1535_p13, %p1529_p10 }
  0x22   :  { %1539 = shalt.err (!%p1536_p0)
}
  0x23   :  { %71 = dma.hbm_to_vmem [thread:$0]  %s1732_s9, 4096, %s66_s22, [#allocation6], %s1546_s15, %s1546_s15, %s1547_s16  }
  0x24   :  { %1540 = dma.done.wait [#allocation4], 4096  }
  0x25   :  { %1541 = vsyncadd [#allocation4], 4294963200 }
  0x26   :  { %1542 = dma.done.wait [#allocation6], 8192  }
  0x27   :  { %1543 = vsyncadd [#allocation6], 4294959104  ;;  %vm108_vm0 = vcmask 1040384   ;;  %vm171_vm1 = vcmask 1044480   ;;  %v1549_v1 = vmov 0   ;;  %vm109_vm2 = vcmask 1041408  }
  0x28   :  { %150 = vmatprep.mubr.bf16.mxu1 %v1549_v1  ;;  %v1550_v2 = vmov 65535   ;;  %vm172_vm3 = vcmask 1045504   ;;  %v1170_v6 = vld.sshfl [vmem:[%s1726_s3] sm:$0x33 pattern:$0x76325410] }
  0x29   :  { %v110_v3 = vsel %vm108_vm0, 4294967295, %v1550_v2  ;;  %v173_v4 = vsel %vm171_vm1, 4294967295, %v1550_v2  ;;  %v103_v8 = vcombine.high %v1170_v6, %v1170_v6  ;;  %v90_v9 = vld [vmem:[%s1724_s1] sm:$0xff]  ;;  %v1322_v15 = vld [vmem:[#allocation3 + $0x70] ss:$8 sps:$4 sm:$0xff]   ;;  %vm104_vm4 = vcmask 23552  }
  0x2a   :  { %v111_v5 = vsel %vm109_vm2, %v110_v3, 0  ;;  %v174_v7 = vsel %vm172_vm3, %v173_v4, 0  ;;  %v1317_v10 = vld [vmem:[%s1725_s2] ss:$8 sps:$4 sm:$0x3f]   ;;  %v91_v18 = vpack.c.bf16 %v90_v9, %v90_v9  ;;  %vm167_vm5 = vcmask 89088  }
  0x2b   :  { %v113_v11 = vand.u32 %v1170_v6, %v111_v5  ;;  %v1319_v12 = vld [vmem:[%s1725_s2 + $0x4] ss:$8 sps:$4 sm:$0x3f]   ;;  %v116_v13 = vand.u32 %v111_v5, %v103_v8  ;;  %v1320_v14 = vld [vmem:[#allocation3 + $0x74] ss:$8 sps:$4 sm:$0xff]   ;;  %v176_v19 = vand.u32 %v1317_v10, %v174_v7  ;;  %vm1162_vm6 = vcmask 7168  }
  0x2c   :  { %v179_v16 = vand.u32 %v1319_v12, %v174_v7  ;;  %v1323_v17 = vld [vmem:[#allocation3 + $0x64] ss:$8 sps:$4 sm:$0xff]   ;;  %444 = vmatprep.subr.bf16.mxu0 %v1320_v14  ;;  %v1325_v20 = vld [vmem:[#allocation3 + $0x60] ss:$8 sps:$4 sm:$0xff]   ;;  %v1326_v21 = vld [vmem:[#allocation3 + $0x54] ss:$8 sps:$4 sm:$0xff]  }
  0x2d   :  { %132 = vmatprep.subr.bf16.mxu1 %v116_v13  ;;  %445 = vmatpush1.bf16.msra.mxu0 %v1322_v15  ;;  %v88_v22 = vld [vmem:[%s1723_s0] sm:$0xff]  ;;  %v1328_v23 = vld [vmem:[#allocation3 + $0x50] ss:$8 sps:$4 sm:$0xff]   ;;  %v224_v15 = vlaneseq }
  0x2e   :  { %133 = vmatpush1.bf16.msra.mxu1 %v113_v11  ;;  %446 = vmatprep.subr.bf16.mxu0 %v1323_v17  ;;  %v1329_v24 = vld [vmem:[#allocation3 + $0x44] ss:$8 sps:$4 sm:$0xff]   ;;  %v89_v25 = vpack.c.bf16 %v88_v22, %v88_v22  ;;  %v1331_v26 = vld [vmem:[#allocation3 + $0x40] ss:$8 sps:$4 sm:$0xff]   ;;  %v1332_v27 = vld [vmem:[#allocation3 + $0x34] ss:$8 sps:$4 sm:$0xff]  }
  0x2f   :  { %195 = vmatprep.subr.bf16.mxu1 %v179_v16  ;;  %v1334_v28 = vld [vmem:[#allocation3 + $0x30] ss:$8 sps:$4 sm:$0xff]   ;;  %v1335_v29 = vld [vmem:[#allocation3 + $0x24] ss:$8 sps:$4 sm:$0xff]   ;;  %v1337_v30 = vld [vmem:[#allocation3 + $0x20] ss:$8 sps:$4 sm:$0xff]  }
  0x30   :  { %v1338_v31 = vld [vmem:[#allocation3 + $0x14] ss:$8 sps:$4 sm:$0xff]   ;;  %v1340_v32 = vld [vmem:[#allocation3 + $0x10] ss:$8 sps:$4 sm:$0xff]   ;;  %v1341_v33 = vld [vmem:[#allocation3 + $0x4] ss:$8 sps:$4 sm:$0xff]  }
  0x31   :  { %1171 = vmatmul.mubr.msk.bf16.vlgmr.msra.gmra.mxu1 %vm104_vm4, %v91_v18  ;;  %447 = vmatpush1.bf16.msra.mxu0 %v1325_v20  ;;  %v1343_v34 = vld [vmem:[#allocation3] ss:$8 sps:$4 sm:$0xff]   ;;  %v1344_v35 = vld [vmem:[#allocation3 + $0xf4] ss:$8 sps:$4 sm:$0xff]   ;;  %v1346_v36 = vld [vmem:[#allocation3 + $0xf0] ss:$8 sps:$4 sm:$0xff]  }
  0x32   :  { %196 = vmatpush1.bf16.msra.mxu1 %v176_v19  ;;  %213 = vmatprep.mubr.bf16.mxu1 %v1549_v1  ;;  %v1347_v37 = vld [vmem:[#allocation3 + $0xe4] ss:$8 sps:$4 sm:$0xff]   ;;  %v1349_v38 = vld [vmem:[#allocation3 + $0xe0] ss:$8 sps:$4 sm:$0xff]   ;;  %v1350_v39 = vld [vmem:[#allocation3 + $0xd4] ss:$8 sps:$4 sm:$0xff]  }
  0x33   :  { %448 = vmatprep.subr.bf16.mxu0 %v1326_v21  ;;  %v1352_v40 = vld [vmem:[#allocation3 + $0xd0] ss:$8 sps:$4 sm:$0xff]   ;;  %v1353_v41 = vld [vmem:[#allocation3 + $0xc4] ss:$8 sps:$4 sm:$0xff]   ;;  %v1355_v42 = vld [vmem:[#allocation3 + $0xc0] ss:$8 sps:$4 sm:$0xff]  }
  0x34   :  { %v1356_v43 = vld [vmem:[#allocation3 + $0xb4] ss:$8 sps:$4 sm:$0xff]   ;;  %v1358_v44 = vld [vmem:[#allocation3 + $0xb0] ss:$8 sps:$4 sm:$0xff]   ;;  %v1359_v45 = vld [vmem:[#allocation3 + $0xa4] ss:$8 sps:$4 sm:$0xff]  }
  0x35   :  { %449 = vmatpush1.bf16.msra.mxu0 %v1328_v23  ;;  %v1361_v46 = vld [vmem:[#allocation3 + $0xa0] ss:$8 sps:$4 sm:$0xff]   ;;  %v1362_v47 = vld [vmem:[#allocation3 + $0x94] ss:$8 sps:$4 sm:$0xff]   ;;  %v1364_v48 = vld [vmem:[#allocation3 + $0x90] ss:$8 sps:$4 sm:$0xff]  }
  0x36   :  { %450 = vmatprep.subr.bf16.mxu0 %v1329_v24  ;;  %v1365_v49 = vld [vmem:[#allocation3 + $0x84] ss:$8 sps:$4 sm:$0xff]   ;;  %v1367_v50 = vld [vmem:[#allocation3 + $0x80] ss:$8 sps:$4 sm:$0xff]   ;;  %v1368_v51 = vld [vmem:[#allocation5 + $0x70] ss:$8 sps:$4 sm:$0xff]  }
  0x37   :  { %v1370_v52 = vld [vmem:[#allocation5 + $0x74] ss:$8 sps:$4 sm:$0xff]   ;;  %v1373_v53 = vld [vmem:[#allocation5 + $0x64] ss:$8 sps:$4 sm:$0xff]   ;;  %v1371_v54 = vld [vmem:[#allocation5 + $0x60] ss:$8 sps:$4 sm:$0xff]  }
  0x38   :  { %693 = vmatprep.subr.bf16.mxu1 %v1370_v52  ;;  %v1376_v55 = vld [vmem:[#allocation5 + $0x54] ss:$8 sps:$4 sm:$0xff]   ;;  %v1374_v56 = vld [vmem:[#allocation5 + $0x50] ss:$8 sps:$4 sm:$0xff]   ;;  %v1379_v57 = vld [vmem:[#allocation5 + $0x44] ss:$8 sps:$4 sm:$0xff]  }
  0x39   :  { %1174 = vmatmul.mubr.msk.bf16.vlgmr.msra.gmra.mxu1 %vm167_vm5, %v89_v25  ;;  %451 = vmatpush1.bf16.msra.mxu0 %v1331_v26  ;;  %v1377_v58 = vld [vmem:[#allocation5 + $0x40] ss:$8 sps:$4 sm:$0xff]   ;;  %v1382_v59 = vld [vmem:[#allocation5 + $0x34] ss:$8 sps:$4 sm:$0xff]   ;;  %v1380_v60 = vld [vmem:[#allocation5 + $0x30] ss:$8 sps:$4 sm:$0xff]  }
  0x3a   :  { %452 = vmatprep.subr.bf16.mxu0 %v1332_v27  ;;  %694 = vmatpush1.bf16.msra.mxu1 %v1368_v51  ;;  %v1385_v61 = vld [vmem:[#allocation5 + $0x24] ss:$8 sps:$4 sm:$0xff]   ;;  %v1383_v62 = vld [vmem:[#allocation5 + $0x20] ss:$8 sps:$4 sm:$0xff]   ;;  %v1388_v63 = vld [vmem:[#allocation5 + $0x14] ss:$8 sps:$4 sm:$0xff]  }
  0x3b   :  { %695 = vmatprep.subr.bf16.mxu1 %v1373_v53  ;;  %v1386_v0 = vld [vmem:[#allocation5 + $0x10] ss:$8 sps:$4 sm:$0xff]   ;;  %v1391_v1 = vld [vmem:[#allocation5 + $0x4] ss:$8 sps:$4 sm:$0xff]   ;;  %v1389_v2 = vld [vmem:[#allocation5] ss:$8 sps:$4 sm:$0xff]  }
  0x3c   :  { %v1394_v3 = vld [vmem:[#allocation5 + $0xf4] ss:$8 sps:$4 sm:$0xff]   ;;  %v1392_v4 = vld [vmem:[#allocation5 + $0xf0] ss:$8 sps:$4 sm:$0xff]   ;;  %v1397_v5 = vld [vmem:[#allocation5 + $0xe4] ss:$8 sps:$4 sm:$0xff]  }
  0x3d   :  { %453 = vmatpush1.bf16.msra.mxu0 %v1334_v28  ;;  %v1395_v6 = vld [vmem:[#allocation5 + $0xe0] ss:$8 sps:$4 sm:$0xff]   ;;  %v1400_v7 = vld [vmem:[#allocation5 + $0xd4] ss:$8 sps:$4 sm:$0xff]   ;;  %v1398_v8 = vld [vmem:[#allocation5 + $0xd0] ss:$8 sps:$4 sm:$0xff]  }
  0x3e   :  { %454 = vmatprep.subr.bf16.mxu0 %v1335_v29  ;;  %696 = vmatpush1.bf16.msra.mxu1 %v1371_v54  ;;  %v1403_v9 = vld [vmem:[#allocation5 + $0xc4] ss:$8 sps:$4 sm:$0xff]   ;;  %v1401_v10 = vld [vmem:[#allocation5 + $0xc0] ss:$8 sps:$4 sm:$0xff]   ;;  %v1406_v11 = vld [vmem:[#allocation5 + $0xb4] ss:$8 sps:$4 sm:$0xff]  }
  0x3f   :  { %697 = vmatprep.subr.bf16.mxu1 %v1376_v55  ;;  %v1404_v12 = vld [vmem:[#allocation5 + $0xb0] ss:$8 sps:$4 sm:$0xff]   ;;  %v1409_v13 = vld [vmem:[#allocation5 + $0xa4] ss:$8 sps:$4 sm:$0xff]   ;;  %v1407_v14 = vld [vmem:[#allocation5 + $0xa0] ss:$8 sps:$4 sm:$0xff]  }
  0x40   :  { %v225_v16 = vshrl.u32 %v224_v15, 7  ;;  %v222_v21 = vld [vmem:[%s1727_s4] sm:$0x3]  ;;  %v1428_v51 = vld [vmem:[#allocation7 + $0x30] ss:$8 sps:$4 sm:$0xff]  }
  0x41   :  { %455 = vmatpush1.bf16.msra.mxu0 %v1337_v30  ;;  %v1433_v52 = vld [vmem:[#allocation7 + $0x24] ss:$8 sps:$4 sm:$0xff]   ;;  %v1431_v53 = vld [vmem:[#allocation7 + $0x20] ss:$8 sps:$4 sm:$0xff]   ;;  %v1436_v54 = vld [vmem:[#allocation7 + $0x14] ss:$8 sps:$4 sm:$0xff]  }
  0x42   :  { %456 = vmatprep.subr.bf16.mxu0 %v1338_v31  ;;  %698 = vmatpush1.bf16.msra.mxu1 %v1374_v56  ;;  %v1648_v19 = vsub.s32 0, %v225_v16  ;;  %v1653_v22 = vsub.s32 1, %v225_v16  ;;  %v1434_v55 = vld [vmem:[#allocation7 + $0x10] ss:$8 sps:$4 sm:$0xff]   ;;  %v1439_v56 = vld [vmem:[#allocation7 + $0x4] ss:$8 sps:$4 sm:$0xff]  }
  0x43   :  { %699 = vmatprep.subr.bf16.mxu1 %v1379_v57  ;;  %v1437_v57 = vld [vmem:[#allocation7] ss:$8 sps:$4 sm:$0xff]  }
  0x44   :  { %v227_v24 = vrot.slane %v222_v21, %v1648_v19  ;;  %v231_v27 = vrot.slane %v222_v21, %v1653_v22  ;;  %v1458_v21 = vld [vmem:[#allocation7 + $0x90] ss:$8 sps:$4 sm:$0xff]  }
  0x45   :  { %457 = vmatpush1.bf16.msra.mxu0 %v1340_v32 }
  0x46   :  { %458 = vmatprep.subr.bf16.mxu0 %v1341_v33  ;;  %700 = vmatpush1.bf16.msra.mxu1 %v1377_v58  ;;  %v1442_v58 = vld [vmem:[#allocation7 + $0xf4] ss:$8 sps:$4 sm:$0xff]  }
  0x47   :  { %701 = vmatprep.subr.bf16.mxu1 %v1382_v59  ;;  %v1440_v59 = vld [vmem:[#allocation7 + $0xf0] ss:$8 sps:$4 sm:$0xff]  }
  0x49   :  { %459 = vmatpush1.bf16.msra.mxu0 %v1343_v34 }
  0x4a   :  { %460 = vmatprep.subr.bf16.mxu0 %v1344_v35  ;;  %702 = vmatpush1.bf16.msra.mxu1 %v1380_v60  ;;  %v1445_v60 = vld [vmem:[#allocation7 + $0xe4] ss:$8 sps:$4 sm:$0xff]  }
  0x4b   :  { %703 = vmatprep.subr.bf16.mxu1 %v1385_v61  ;;  %v1443_v61 = vld [vmem:[#allocation7 + $0xe0] ss:$8 sps:$4 sm:$0xff]  }
  0x4d   :  { %461 = vmatpush2.bf16.msra.mxu0 %v1346_v36 }
  0x4e   :  { %462 = vmatprep.subr.bf16.mxu0 %v1347_v37  ;;  %704 = vmatpush1.bf16.msra.mxu1 %v1383_v62  ;;  %v1448_v62 = vld [vmem:[#allocation7 + $0xd4] ss:$8 sps:$4 sm:$0xff]  }
  0x4f   :  { %705 = vmatprep.subr.bf16.mxu1 %v1388_v63  ;;  %v1446_v63 = vld [vmem:[#allocation7 + $0xd0] ss:$8 sps:$4 sm:$0xff]  }
  0x51   :  { %463 = vmatpush2.bf16.msra.mxu0 %v1349_v38  ;;  %v1412_v38 = vld [vmem:[#allocation5 + $0x94] ss:$8 sps:$4 sm:$0xff]  }
  0x52   :  { %464 = vmatprep.subr.bf16.mxu0 %v1350_v39  ;;  %706 = vmatpush1.bf16.msra.mxu1 %v1386_v0  ;;  %v1410_v39 = vld [vmem:[#allocation5 + $0x90] ss:$8 sps:$4 sm:$0xff]   ;;  %v1451_v0 = vld [vmem:[#allocation7 + $0xc4] ss:$8 sps:$4 sm:$0xff]  }
  0x53   :  { %707 = vmatprep.subr.bf16.mxu1 %v1391_v1  ;;  %v1449_v1 = vld [vmem:[#allocation7 + $0xc0] ss:$8 sps:$4 sm:$0xff]  }
  0x55   :  { %465 = vmatpush2.bf16.msra.mxu0 %v1352_v40  ;;  %v1415_v40 = vld [vmem:[#allocation5 + $0x84] ss:$8 sps:$4 sm:$0xff]  }
  0x56   :  { %466 = vmatprep.subr.bf16.mxu0 %v1353_v41  ;;  %708 = vmatpush1.bf16.msra.mxu1 %v1389_v2  ;;  %v1413_v41 = vld [vmem:[#allocation5 + $0x80] ss:$8 sps:$4 sm:$0xff]   ;;  %v1454_v2 = vld [vmem:[#allocation7 + $0xb4] ss:$8 sps:$4 sm:$0xff]  }
  0x57   :  { %709 = vmatprep.subr.bf16.mxu1 %v1394_v3  ;;  %v1452_v3 = vld [vmem:[#allocation7 + $0xb0] ss:$8 sps:$4 sm:$0xff]  }
  0x59   :  { %467 = vmatpush2.bf16.msra.mxu0 %v1355_v42  ;;  %v1416_v42 = vld [vmem:[#allocation7 + $0x70] ss:$8 sps:$4 sm:$0xff]  }
  0x5a   :  { %468 = vmatprep.subr.bf16.mxu0 %v1356_v43  ;;  %710 = vmatpush2.bf16.msra.mxu1 %v1392_v4  ;;  %v1418_v43 = vld [vmem:[#allocation7 + $0x74] ss:$8 sps:$4 sm:$0xff]   ;;  %v1457_v4 = vld [vmem:[#allocation7 + $0xa4] ss:$8 sps:$4 sm:$0xff]  }
  0x5b   :  { %711 = vmatprep.subr.bf16.mxu1 %v1397_v5  ;;  %v1455_v5 = vld [vmem:[#allocation7 + $0xa0] ss:$8 sps:$4 sm:$0xff]  }
  0x5d   :  { %469 = vmatpush2.bf16.msra.mxu0 %v1358_v44  ;;  %v1421_v44 = vld [vmem:[#allocation7 + $0x64] ss:$8 sps:$4 sm:$0xff]  }
  0x5e   :  { %470 = vmatprep.subr.bf16.mxu0 %v1359_v45  ;;  %712 = vmatpush2.bf16.msra.mxu1 %v1395_v6  ;;  %v1419_v45 = vld [vmem:[#allocation7 + $0x60] ss:$8 sps:$4 sm:$0xff]  }
  0x5f   :  { %713 = vmatprep.subr.bf16.mxu1 %v1400_v7  ;;  %v272_v6 = vld [vmem:[%s1729_s6] sm:$0x3] }
  0x60   :  { %v277_v7 = vrot.slane %v272_v6, %v1648_v19 }
  0x61   :  { %471 = vmatpush2.bf16.msra.mxu0 %v1361_v46  ;;  %v1424_v46 = vld [vmem:[#allocation7 + $0x54] ss:$8 sps:$4 sm:$0xff]  }
  0x62   :  { %472 = vmatprep.subr.bf16.mxu0 %v1362_v47  ;;  %714 = vmatpush2.bf16.msra.mxu1 %v1398_v8  ;;  %v1422_v47 = vld [vmem:[#allocation7 + $0x50] ss:$8 sps:$4 sm:$0xff]   ;;  %v281_v8 = vrot.slane %v272_v6, %v1653_v22 }
  0x63   :  { %715 = vmatprep.subr.bf16.mxu1 %v1403_v9 }
  0x65   :  { %473 = vmatpush2.bf16.msra.mxu0 %v1364_v48  ;;  %v1427_v48 = vld [vmem:[#allocation7 + $0x44] ss:$8 sps:$4 sm:$0xff]  }
  0x66   :  { %474 = vmatprep.subr.bf16.mxu0 %v1365_v49  ;;  %716 = vmatpush2.bf16.msra.mxu1 %v1401_v10  ;;  %v1425_v49 = vld [vmem:[#allocation7 + $0x40] ss:$8 sps:$4 sm:$0xff]  }
  0x67   :  { %717 = vmatprep.subr.bf16.mxu1 %v1406_v11 }
  0x69   :  { %475 = vmatpush2.bf16.msra.mxu0 %v1367_v50  ;;  %v1430_v50 = vld [vmem:[#allocation7 + $0x34] ss:$8 sps:$4 sm:$0xff]  }
  0x6a   :  { %718 = vmatpush2.bf16.msra.mxu1 %v1404_v12  ;;  %942 = vmatprep.subr.bf16.mxu0 %v1418_v43 }
  0x6b   :  { %719 = vmatprep.subr.bf16.mxu1 %v1409_v13 }
  0x6e   :  { %720 = vmatpush2.bf16.msra.mxu1 %v1407_v14 }
  0x6f   :  { %721 = vmatprep.subr.bf16.mxu1 %v1412_v38 }
  0x72   :  { %722 = vmatpush2.bf16.msra.mxu1 %v1410_v39 }
  0x73   :  { %723 = vmatprep.subr.bf16.mxu1 %v1415_v40 }
  0x76   :  { %724 = vmatpush2.bf16.msra.mxu1 %v1413_v41 }
  0xf1   :  { %v152_v17 = vpop.f32.mrf.mxu1 }
  0xf3   :  { %v154_v18 = vpop.f32.mrf.mxu1 }
  0xf5   :  { %v156_v20 = vpop.f32.mrf.mxu1 }
  0xf6   :  { %v1460_v20 = vld [vmem:[#allocation7 + $0x94] ss:$8 sps:$4 sm:$0xff]  }
  0xf7   :  { %v157_v23 = vpop.f32.mrf.mxu1 }
  0xf8   :  { %v1463_v23 = vld [vmem:[#allocation7 + $0x84] ss:$8 sps:$4 sm:$0xff]  }
  0xf9   :  { %v215_v25 = vpop.f32.mrf.mxu1 }
  0xfa   :  { %v216_v26 = vadd.f32 %v215_v25, %v152_v17  ;;  %v1464_v25 = vld [vmem:[%s1734_s11 + $0x78] sm:$0xff]  }
  0xfb   :  { %v217_v28 = vpop.f32.mrf.mxu1  ;;  %1288 = vmatprep.subr.bf16.mxu1 %v1464_v25 }
  0xfc   :  { %v234_v29 = vadd.f32 %v227_v24, %v216_v26  ;;  %v218_v30 = vadd.f32 %v217_v28, %v154_v18  ;;  %v1461_v24 = vld [vmem:[#allocation7 + $0x80] ss:$8 sps:$4 sm:$0xff]   ;;  %v1465_v26 = vld [vmem:[%s1734_s11 + $0x38] sm:$0xff]   ;;  %v1467_v28 = vld [vmem:[%s1734_s11 + $0x30] sm:$0xff]  }
  0xfd   :  { %v219_v31 = vpop.f32.mrf.mxu1 }
  0xfe   :  { %v235_v32 = vadd.f32 %v231_v27, %v218_v30  ;;  %v236_v33 = vmax.f32 %v234_v29, 0.0  ;;  %v1466_v27 = vld [vmem:[%s1734_s11 + $0x70] sm:$0xff]   ;;  %v1468_v29 = vld [vmem:[%s1734_s11 + $0x68] sm:$0xff]   ;;  %v1470_v31 = vld [vmem:[%s1734_s11 + $0x60] sm:$0xff]  }
  0xff   :  { %v220_v34 = vpop.f32.mrf.mxu1  ;;  %v1469_v30 = vld [vmem:[%s1734_s11 + $0x28] sm:$0xff]  }
 0x100   :  { %v237_v35 = vmax.f32 %v235_v32, 0.0  ;;  %v238_v37 = vpack.c.bf16 %v236_v33, %v236_v33  ;;  %v1471_v32 = vld [vmem:[%s1734_s11 + $0x20] sm:$0xff]   ;;  %v1472_v33 = vld [vmem:[%s1734_s11 + $0x58] sm:$0xff]  }
 0x101   :  { %v1473_v34 = vld [vmem:[%s1734_s11 + $0x18] sm:$0xff]  }
 0x102   :  { %v239_v36 = vpack.c.bf16 %v237_v35, %v237_v35  ;;  %v1474_v35 = vld [vmem:[%s1734_s11 + $0x50] sm:$0xff]  }
 0x104   :  { %476 = vmatprep.mubr.bf16.mxu0 %v239_v36  ;;  %v1475_v36 = vld [vmem:[%s1734_s11 + $0x10] sm:$0xff]  }
 0x105   :  { %477 = vmatmul.mubr.bf16.vlgmr.msra.gmra.mxu0 %v238_v37  ;;  %v521_v37 = vld [vmem:[%s1731_s8] sm:$0x3] }
 0x106   :  { %943 = vmatpush1.bf16.msra.mxu0 %v1416_v42  ;;  %v526_v38 = vrot.slane %v521_v37, %v1648_v19  ;;  %v530_v39 = vrot.slane %v521_v37, %v1653_v22 }
 0x107   :  { %944 = vmatprep.subr.bf16.mxu0 %v1421_v44 }
 0x10a   :  { %945 = vmatpush1.bf16.msra.mxu0 %v1419_v45 }
 0x10b   :  { %946 = vmatprep.subr.bf16.mxu0 %v1424_v46 }
 0x10e   :  { %947 = vmatpush1.bf16.msra.mxu0 %v1422_v47 }
 0x10f   :  { %948 = vmatprep.subr.bf16.mxu0 %v1427_v48 }
 0x112   :  { %949 = vmatpush1.bf16.msra.mxu0 %v1425_v49 }
 0x113   :  { %950 = vmatprep.subr.bf16.mxu0 %v1430_v50  ;;  %v1476_v50 = vld [vmem:[%s1734_s11 + $0x48] sm:$0xff]  }
 0x116   :  { %951 = vmatpush1.bf16.msra.mxu0 %v1428_v51  ;;  %v1477_v51 = vld [vmem:[%s1734_s11 + $0x8] sm:$0xff]  }
 0x117   :  { %952 = vmatprep.subr.bf16.mxu0 %v1433_v52  ;;  %v1478_v52 = vld [vmem:[%s1734_s11 + $0x40] sm:$0xff]  }
 0x11a   :  { %953 = vmatpush1.bf16.msra.mxu0 %v1431_v53  ;;  %v1479_v53 = vld [vmem:[%s1734_s11] sm:$0xff]  }
 0x11b   :  { %954 = vmatprep.subr.bf16.mxu0 %v1436_v54  ;;  %v770_v54 = vld [vmem:[%s1733_s10] sm:$0x3] }
 0x11e   :  { %955 = vmatpush1.bf16.msra.mxu0 %v1434_v55  ;;  %v775_v55 = vrot.slane %v770_v54, %v1648_v19 }
 0x11f   :  { %956 = vmatprep.subr.bf16.mxu0 %v1439_v56  ;;  %v779_v56 = vrot.slane %v770_v54, %v1653_v22 }
 0x122   :  { %957 = vmatpush1.bf16.msra.mxu0 %v1437_v57 }
 0x123   :  { %958 = vmatprep.subr.bf16.mxu0 %v1442_v58 }
 0x126   :  { %959 = vmatpush2.bf16.msra.mxu0 %v1440_v59 }
 0x127   :  { %960 = vmatprep.subr.bf16.mxu0 %v1445_v60 }
 0x12a   :  { %961 = vmatpush2.bf16.msra.mxu0 %v1443_v61 }
 0x12b   :  { %962 = vmatprep.subr.bf16.mxu0 %v1448_v62 }
 0x12e   :  { %963 = vmatpush2.bf16.msra.mxu0 %v1446_v63 }
 0x12f   :  { %964 = vmatprep.subr.bf16.mxu0 %v1451_v0 }
 0x132   :  { %965 = vmatpush2.bf16.msra.mxu0 %v1449_v1 }
 0x133   :  { %966 = vmatprep.subr.bf16.mxu0 %v1454_v2 }
 0x136   :  { %967 = vmatpush2.bf16.msra.mxu0 %v1452_v3 }
 0x137   :  { %968 = vmatprep.subr.bf16.mxu0 %v1457_v4  ;;  %v1271_v4 = vld [vmem:[#allocation2] ss:$0 sm:$0xff] }
 0x13a   :  { %969 = vmatpush2.bf16.msra.mxu0 %v1455_v5 }
 0x13b   :  { %970 = vmatprep.subr.bf16.mxu0 %v1460_v20 }
 0x13e   :  { %971 = vmatpush2.bf16.msra.mxu0 %v1458_v21 }
 0x13f   :  { %972 = vmatprep.subr.bf16.mxu0 %v1463_v23 }
 0x142   :  { %973 = vmatpush2.bf16.msra.mxu0 %v1461_v24 }
 0x1c5   :  { %v478_v9 = vpop.f32.mrf.mxu0 }
 0x1c6   :  { %v479_v10 = vadd.f32 %v478_v9, %v277_v7 }
 0x1c7   :  { %v480_v11 = vpop.f32.mrf.mxu0 }
 0x1c8   :  { %v481_v12 = vadd.f32 %v480_v11, %v281_v8  ;;  %v485_v13 = vmax.f32 %v479_v10, 0.0 }
 0x1c9   :  { %v482_v14 = vpop.f32.mrf.mxu0 }
 0x1ca   :  { %v486_v15 = vmax.f32 %v481_v12, 0.0  ;;  %v487_v18 = vpack.c.bf16 %v485_v13, %v485_v13 }
 0x1cb   :  { %v483_v16 = vpop.f32.mrf.mxu0 }
 0x1cc   :  { %v488_v17 = vpack.c.bf16 %v486_v15, %v486_v15 }
 0x1ce   :  { %725 = vmatprep.mubr.bf16.mxu1 %v488_v17 }
 0x1cf   :  { %726 = vmatmul.mubr.bf16.vlgmr.msra.gmra.mxu1 %v487_v18 }
 0x1d0   :  { %1289 = vmatpush3.bf16.msra.mxu1 %v1465_v26 }
 0x1d1   :  { %1290 = vmatprep.subr.bf16.mxu1 %v1466_v27 }
 0x1d4   :  { %1291 = vmatpush3.bf16.msra.mxu1 %v1467_v28 }
 0x1d5   :  { %1292 = vmatprep.subr.bf16.mxu1 %v1468_v29 }
 0x1d8   :  { %1293 = vmatpush3.bf16.msra.mxu1 %v1469_v30 }
 0x1d9   :  { %1294 = vmatprep.subr.bf16.mxu1 %v1470_v31 }
 0x1dc   :  { %1295 = vmatpush3.bf16.msra.mxu1 %v1471_v32 }
 0x1dd   :  { %1296 = vmatprep.subr.bf16.mxu1 %v1472_v33 }
 0x1e0   :  { %1297 = vmatpush3.bf16.msra.mxu1 %v1473_v34 }
 0x1e1   :  { %1298 = vmatprep.subr.bf16.mxu1 %v1474_v35 }
 0x1e4   :  { %1299 = vmatpush3.bf16.msra.mxu1 %v1475_v36 }
 0x1e5   :  { %1300 = vmatprep.subr.bf16.mxu1 %v1476_v50 }
 0x1e8   :  { %1301 = vmatpush3.bf16.msra.mxu1 %v1477_v51 }
 0x1e9   :  { %1302 = vmatprep.subr.bf16.mxu1 %v1478_v52 }
 0x1ec   :  { %1303 = vmatpush3.bf16.msra.mxu1 %v1479_v53 }
 0x28f   :  { %v727_v40 = vpop.f32.mrf.mxu1 }
 0x290   :  { %v728_v41 = vadd.f32 %v727_v40, %v526_v38 }
 0x291   :  { %v729_v42 = vpop.f32.mrf.mxu1 }
 0x292   :  { %v730_v43 = vadd.f32 %v729_v42, %v530_v39  ;;  %v734_v44 = vmax.f32 %v728_v41, 0.0 }
 0x293   :  { %v731_v45 = vpop.f32.mrf.mxu1 }
 0x294   :  { %v735_v46 = vmax.f32 %v730_v43, 0.0  ;;  %v736_v49 = vpack.c.bf16 %v734_v44, %v734_v44 }
 0x295   :  { %v732_v47 = vpop.f32.mrf.mxu1 }
 0x296   :  { %v737_v48 = vpack.c.bf16 %v735_v46, %v735_v46 }
 0x298   :  { %974 = vmatprep.mubr.bf16.mxu0 %v737_v48 }
 0x299   :  { %975 = vmatmul.mubr.bf16.vlgmr.msra.gmra.mxu0 %v736_v49 }
 0x359   :  { %v976_v57 = vpop.f32.mrf.mxu0 }
 0x35a   :  { %v977_v58 = vadd.f32 %v976_v57, %v775_v55 }
 0x35b   :  { %v978_v59 = vpop.f32.mrf.mxu0 }
 0x35c   :  { %v979_v60 = vadd.f32 %v978_v59, %v779_v56  ;;  %v983_v61 = vmax.f32 %v977_v58, 0.0 }
 0x35d   :  { %v980_v62 = vpop.f32.mrf.mxu0 }
 0x35e   :  { %v984_v63 = vmax.f32 %v979_v60, 0.0  ;;  %v985_v2 = vpack.c.bf16 %v983_v61, %v983_v61 }
 0x35f   :  { %v981_v0 = vpop.f32.mrf.mxu0 }
 0x360   :  { %v986_v1 = vpack.c.bf16 %v984_v63, %v984_v63 }
 0x362   :  { %1154 = vmatprep.mubr.bf16.mxu1 %v986_v1 }
 0x363   :  { %1155 = vmatmul.mubr.bf16.vlgmr.msra.gmra.mxu1 %v985_v2 }
 0x423   :  { %v1304_v3 = vpop.f32.mrf.mxu1 }
 0x425   :  { %v1305_v5 = vpop.f32.mrf.mxu1 }
 0x426   :  { %v1306_v6 = vadd.f32 %v1305_v5, %v1304_v3 }
 0x427   :  { %v1307_v19 = vpop.f32.mrf.mxu1 }
 0x428   :  { %v1157_v7 = vadd.f32 %v1306_v6, %v1271_v4 }
 0x429   :  { %v1308_v22 = vpop.f32.mrf.mxu1 }
 0x42a   :  { %1163 = vst.msk [vmem:[%s1736_s13] sm:$0xff] %vm1162_vm6, %v1157_v7 }
 0x42b   :  { %1168 = vsyncpa [#allocation4], 1 }
 0x42c   :  { %1169 = vsyncpa [#allocation6], 1 }

</bundles_post_ra>
